<compile_context>
chip_gen: v6e
topology: v6e:2x2x1
jax: 0.10.0
libtpu: 0.0.40
codegen_flags: <defaults>
</compile_context>

<pallas_src>
import functools

import numpy as np
import jax
import jax.numpy as jnp
from jax import lax
from jax.experimental import pallas as pl
from jax.experimental.pallas import tpu as pltpu


# ----------------------------------------------------------------------------
# Pallas kernel: whole forward pass on one batch tile (batch on the lane axis).
# ----------------------------------------------------------------------------
def _ar_layer2_kernel(zt_ref, w1t_ref, w2t_ref, b2_ref, p_ext_ref, out_ref, *,
                      act_dtype):
    d = out_ref.shape[0] - 1                          # output_dim D
    zt = zt_ref[...]                                  # (D+1, TB) f32; row D = ones

    # Fused first layer of all 2*(D-1) MLPs: one matmul (b1 folded into the
    # ones-row contraction) + one wide tanh in act_dtype (bf16 on v6e/v7x).
    h = jnp.tanh(
        jnp.dot(w1t_ref[...], zt.astype(w1t_ref.dtype),
                preferred_element_type=jnp.float32).astype(act_dtype))   # (H, TB)

    # Block-diagonal second layer -> [S ; M] rows (batch stays on lanes).
    sm = jnp.dot(w2t_ref[...], h.astype(w2t_ref.dtype),
                 preferred_element_type=jnp.float32) + b2_ref[...]       # (2D, TB)
    s = sm[:d, :]                                     # (D, TB) sublane slice
    m = sm[d:2 * d, :]                                # (D, TB) sublane slice

    # log|det J| = sum_i s_i : 8-sublane XLU reduce, consistent with exp(s).
    ljd = jnp.sum(s, axis=0, keepdims=True)           # (1, TB)

    # Autoregressive affine transform, then det-1 linear mixing (P_ext has a
    # zero last row reserved for the ljd slot).
    x_pre = zt[:d, :] * jnp.exp(s) + m                # (D, TB) f32, lane-dense
    x = jnp.dot(p_ext_ref[...], x_pre,
                preferred_element_type=jnp.float32)   # (D+1, TB)

    row = lax.broadcasted_iota(jnp.int32, x.shape, 0)
    out_ref[...] = jnp.where(row == d, ljd, x)        # [x ; ljd] one dense slab


# ----------------------------------------------------------------------------
# Batch-tile selection: as large as possible (cap 2048), prefer an even grid
# (>= 2 steps) so the "parallel" grid axis can be split across v7x's two TCs.
# ----------------------------------------------------------------------------
def _pick_batch_tile(B, cap=2048):
    if B % 128 != 0:
        return B                                       # single full-array block
    cands = [tb for tb in range(128, min(B, cap) + 1, 128) if B % tb == 0]
    if not cands:
        return B
    even = [tb for tb in cands if (B // tb) % 2 == 0]
    return max(even) if even else max(cands)


# ----------------------------------------------------------------------------
# Wrapper: batch-tiled pallas_call (batch-on-lanes layout).
# ----------------------------------------------------------------------------
def autoregressive_layer2_forward(z, packed, *, tb=None, act_dtype=None):
    W1T, W2T, b2, P_ext = packed
    B, D = z.shape
    H = W1T.shape[0]
    TB = tb if tb is not None else _pick_batch_tile(B)
    assert B % TB == 0, "batch must be divisible by the batch tile"
    grid = (pl.cdiv(B, TB),)
    # Activation dtype follows the weight dtype unless overridden
    # (pass act_dtype=jnp.float32 on v5e: no bf16 VPU/EUP there).
    act = act_dtype if act_dtype is not None else W2T.dtype

    # Batch-on-lanes: the kernel sees z as a (D+1, B) slab whose last row is
    # ones (folds b1 into the first matmul's contraction).
    zt_aug = jnp.concatenate(
        [z.T.astype(jnp.float32), jnp.ones((1, B), jnp.float32)], axis=0)

    # VMEM limit from the real resident set: weights once + double-buffered
    # z/out tiles + intermediate headroom; capped at 32 MiB for v7x's 64 MiB.
    nbytes = lambda a: int(np.prod(a.shape)) * a.dtype.itemsize
    weight_bytes = sum(nbytes(a) for a in (W1T, W2T, b2, P_ext))
    io_bytes = 2 * 2 * (D + 1) * TB * 4
    interm_bytes = 3 * H * TB * 4
    vmem_limit = int(min(max(4 * (weight_bytes + io_bytes + interm_bytes), 8 << 20),
                         32 << 20))

    kernel = functools.partial(_ar_layer2_kernel, act_dtype=act)

    def build(single_buffer_weights):
        wkw = {"pipeline_mode": pl.Buffered(1)} if single_buffer_weights else {}

        def wspec(shape):                              # constant weight block
            return pl.BlockSpec(shape, lambda i: (0, 0), **wkw)

        return pl.pallas_call(
            kernel,
            out_shape=jax.ShapeDtypeStruct((D + 1, B), jnp.float32),
            grid=grid,
            in_specs=[pl.BlockSpec((D + 1, TB), lambda i: (0, i)),   # z^T (aug) tile
                      wspec(W1T.shape), wspec(W2T.shape),
                      wspec(b2.shape), wspec(P_ext.shape)],
            out_specs=pl.BlockSpec((D + 1, TB), lambda i: (0, i)),
            compiler_params=pltpu.CompilerParams(
                dimension_semantics=("parallel",),                   # dual-TC on v7x
                vmem_limit_bytes=vmem_limit),
        )

    try:
        out = build(True)(zt_aug, W1T, W2T, b2, P_ext)
    except Exception:
        # Fallback for jax builds whose TPU lowering does not accept
        # pipeline_mode on top-level pallas_call BlockSpecs (default 2-buffer).
        out = build(False)(zt_aug, W1T, W2T, b2, P_ext)

    return out[:D].T, out[D]                           # x (B, D), log_jac_det (B,)


# ----------------------------------------------------------------------------
# Parameter construction (matches the module's __init__ shapes) and packing.
# ----------------------------------------------------------------------------
def make_raw_params(D, key):
    K = D - 1

    def init_mlp(k_key, din):
        k1, k2, k3, k4 = jax.random.split(k_key, 4)
        b = 1.0 / np.sqrt(din)
        W1 = jax.random.uniform(k1, (din, din), jnp.float32, -b, b)
        b1 = jax.random.uniform(k2, (din,), jnp.float32, -b, b)
        W2 = jax.random.uniform(k3, (1, din), jnp.float32, -b, b)
        b2 = jax.random.uniform(k4, (1,), jnp.float32, -b, b)
        return (np.asarray(W1), np.asarray(b1), np.asarray(W2), np.asarray(b2))

    keys = jax.random.split(key, 2 * K + 1)
    raw_s = [init_mlp(keys[2 * k], k + 1) for k in range(K)]
    raw_m = [init_mlp(keys[2 * k + 1], k + 1) for k in range(K)]

    # InvertibleMapping: det-1 linear map P = L @ U, unit-triangular L and U.
    kL, kU = jax.random.split(keys[-1])
    L = np.tril(np.asarray(jax.random.normal(kL, (D, D), jnp.float32)) * 0.3, -1) \
        + np.eye(D, dtype=np.float32)
    U = np.triu(np.asarray(jax.random.normal(kU, (D, D), jnp.float32)) * 0.3, 1) \
        + np.eye(D, dtype=np.float32)
    P = (L @ U).astype(np.float32)
    return raw_s, raw_m, P


def pack_params(raw_s, raw_m, s0, m0, P, D, weight_dtype=jnp.bfloat16):
    """Fuse all per-column MLPs into transposed, batch-on-lanes operands.

    W1T: (H, D+1) first layer (column D holds b1, contracted against a ones row).
    W2T: (2D, H) block-diagonal second layer -> [S ; M] rows.
    b2 : (2D, 1) f32 (row 0 = s0, row D = m0 constant columns).
    P_ext: (D+1, D) f32, rows 0..D-1 = P (x^T = P @ x_pre^T), zero last row.
    Zero padding is exact: padded hidden slots see weight 0, bias 0 -> tanh(0)=0,
    and their second-layer entries are 0.
    """
    K = D - 1
    H = max(128, ((2 * K * D + 127) // 128) * 128)       # lane-padded hidden width

    W1T = np.zeros((H, D + 1), np.float32)
    W2T = np.zeros((2 * D, H), np.float32)
    b2 = np.zeros((2 * D, 1), np.float32)

    for k in range(K):
        din = k + 1
        # scale net k -> S row k+1, hidden slots [k*D, k*D+din)
        w1, bb1, w2, bb2 = raw_s[k]
        r0 = k * D
        W1T[r0:r0 + din, :din] = w1
        W1T[r0:r0 + din, D] = bb1
        W2T[k + 1, r0:r0 + din] = w2[0]
        b2[k + 1, 0] = bb2[0]
        # shift net k -> M row D+k+1, hidden slots [(K+k)*D, (K+k)*D+din)
        w1, bb1, w2, bb2 = raw_m[k]
        r0 = (K + k) * D
        W1T[r0:r0 + din, :din] = w1
        W1T[r0:r0 + din, D] = bb1
        W2T[D + k + 1, r0:r0 + din] = w2[0]
        b2[D + k + 1, 0] = bb2[0]

    b2[0, 0] = s0                                        # constant s0 column
    b2[D, 0] = m0                                        # constant m0 column

    P_ext = np.zeros((D + 1, D), np.float32)
    P_ext[:D, :] = P

    return (jnp.asarray(W1T, weight_dtype),              # MXU weights
            jnp.asarray(W2T, weight_dtype),
            jnp.asarray(b2, jnp.float32),                # biases / elementwise: f32
            jnp.asarray(P_ext, jnp.float32))


# ----------------------------------------------------------------------------
# Float64 numpy reference (mirrors the PyTorch forward branch, unfused MLPs).
# ----------------------------------------------------------------------------
def ref_forward_np(z, raw_s, raw_m, s0, m0, P):
    z = np.asarray(z, np.float64)
    B, D = z.shape
    S = np.zeros((B, D), np.float64)
    M = np.zeros((B, D), np.float64)
    S[:, 0] = s0
    M[:, 0] = m0
    for i in range(1, D):
        w1, b1, w2, b2 = [np.asarray(a, np.float64) for a in raw_s[i - 1]]
        h = np.tanh(z[:, :i] @ w1.T + b1)
        S[:, i] = (h @ w2.T + b2)[:, 0]
        w1, b1, w2, b2 = [np.asarray(a, np.float64) for a in raw_m[i - 1]]
        h = np.tanh(z[:, :i] @ w1.T + b1)
        M[:, i] = (h @ w2.T + b2)[:, 0]
    x_pre = z * np.exp(S) + M
    x = x_pre @ np.asarray(P, np.float64).T
    ljd = S.sum(axis=1)
    return x, ljd


if __name__ == "__main__":
    B, D = 256, 8                                        # batch, output_dim
    key = jax.random.PRNGKey(0)
    kz, kp = jax.random.split(key)
    z = jax.random.normal(kz, (B, D), jnp.float32)

    raw_s, raw_m, P = make_raw_params(D, kp)
    s0, m0 = 0.0, 1.0                                    # s0 = zeros(1), m0 = ones(1)
    x_ref, ljd_ref = ref_forward_np(z, raw_s, raw_m, s0, m0, P)

    def nmax_err(a, b):                                  # max-abs error / ref scale
        a = np.asarray(a, np.float64)
        b = np.asarray(b, np.float64)
        return float(np.max(np.abs(a - b)) / (np.max(np.abs(b)) + 1e-6))

    # f32-weight config: structural check against float64 numpy.  The MXU still
    # rounds matmul inputs to bf16 at default precision, so this is a structure
    # check (structural bugs give O(1) normalized errors), not a ULP check.
    packed_f32 = pack_params(raw_s, raw_m, s0, m0, P, D, weight_dtype=jnp.float32)
    x32, l32 = autoregressive_layer2_forward(z, packed_f32)
    jax.block_until_ready((x32, l32))
    assert x32.shape == (B, D) and l32.shape == (B,)
    assert nmax_err(x32, x_ref) < 1e-1, nmax_err(x32, x_ref)
    assert nmax_err(l32, ljd_ref) < 1e-1, nmax_err(l32, ljd_ref)

    # bf16-weight config (recommended on v5e / v6e / v7x): exp(s) amplifies
    # weight rounding, hence the looser normalized tolerance.
    packed_bf16 = pack_params(raw_s, raw_m, s0, m0, P, D, weight_dtype=jnp.bfloat16)
    x16, l16 = autoregressive_layer2_forward(z, packed_bf16)
    jax.block_until_ready((x16, l16))
    assert nmax_err(x16, x_ref) < 1.5e-1, nmax_err(x16, x_ref)
    assert nmax_err(l16, ljd_ref) < 1.5e-1, nmax_err(l16, ljd_ref)

    print("KERNEL_OK")
</pallas_src>

<mosaic_0001>
module attributes {stable_mosaic.version = 11 : i64} {
  func.func @_ar_layer2_kernel(%arg0: i32, %arg1: memref<9x128xf32, #tpu.memory_space<vmem>>, %arg2: memref<128x9xf32, #tpu.memory_space<vmem>>, %arg3: memref<16x128xf32, #tpu.memory_space<vmem>>, %arg4: memref<16x1xf32, #tpu.memory_space<vmem>>, %arg5: memref<9x8xf32, #tpu.memory_space<vmem>>, %arg6: memref<9x128xf32, #tpu.memory_space<vmem>>) attributes {dimension_semantics = [#tpu.dimension_semantics<parallel>], iteration_bounds = array<i64: 2>, scalar_prefetch = 0 : i64, scratch_operands = 0 : i64, tpu.core_type = #tpu.core_type<tc>, window_params = [{transform_indices = @transform_0, window_bounds = array<i64: 9, 128>}, {pipeline_mode = #tpu.pipeline_mode<synchronous>, transform_indices = @transform_1, window_bounds = array<i64: 128, 9>}, {pipeline_mode = #tpu.pipeline_mode<synchronous>, transform_indices = @transform_2, window_bounds = array<i64: 16, 128>}, {pipeline_mode = #tpu.pipeline_mode<synchronous>, transform_indices = @transform_3, window_bounds = array<i64: 16, 1>}, {pipeline_mode = #tpu.pipeline_mode<synchronous>, transform_indices = @transform_4, window_bounds = array<i64: 9, 8>}, {transform_indices = @transform_5, window_bounds = array<i64: 9, 128>}]} {
    %c0 = arith.constant 0 : index
    %c0_0 = arith.constant 0 : index
    %0 = vector.load %arg1[%c0, %c0_0] : memref<9x128xf32, #tpu.memory_space<vmem>>, vector<9x128xf32>
    %c0_1 = arith.constant 0 : index
    %c0_2 = arith.constant 0 : index
    %1 = vector.load %arg2[%c0_1, %c0_2] : memref<128x9xf32, #tpu.memory_space<vmem>>, vector<128x9xf32>
    %cst = arith.constant dense<0.000000e+00> : vector<128x128xf32>
    %2 = tpu.matmul %1, %0, %cst {dimension_numbers = #tpu.dot_dimension_numbers<[1], [0], [0], [1], [0, 0, 1, 1], [], []>} : vector<128x9xf32>, vector<9x128xf32>, vector<128x128xf32> -> vector<128x128xf32>
    %3 = math.tanh %2 : vector<128x128xf32>
    %c0_3 = arith.constant 0 : index
    %c0_4 = arith.constant 0 : index
    %4 = vector.load %arg3[%c0_3, %c0_4] : memref<16x128xf32, #tpu.memory_space<vmem>>, vector<16x128xf32>
    %cst_5 = arith.constant dense<0.000000e+00> : vector<16x128xf32>
    %5 = tpu.matmul %4, %3, %cst_5 {dimension_numbers = #tpu.dot_dimension_numbers<[1], [0], [0], [1], [0, 0, 1, 1], [], []>} : vector<16x128xf32>, vector<128x128xf32>, vector<16x128xf32> -> vector<16x128xf32>
    %c0_6 = arith.constant 0 : index
    %c0_7 = arith.constant 0 : index
    %6 = vector.load %arg4[%c0_6, %c0_7] : memref<16x1xf32, #tpu.memory_space<vmem>>, vector<16x1xf32>
    %7 = vector.broadcast %6 : vector<16x1xf32> to vector<16x128xf32>
    %8 = arith.addf %5, %7 : vector<16x128xf32>
    %9 = vector.extract_strided_slice %8 {offsets = [0, 0], sizes = [8, 128], strides = [1, 1]} : vector<16x128xf32> to vector<8x128xf32>
    %10 = vector.extract_strided_slice %8 {offsets = [8, 0], sizes = [8, 128], strides = [1, 1]} : vector<16x128xf32> to vector<8x128xf32>
    %cst_8 = arith.constant dense<0.000000e+00> : vector<128xf32>
    %11 = vector.multi_reduction <add>, %9, %cst_8 [0] : vector<8x128xf32> to vector<128xf32>
    %12 = vector.shape_cast %11 : vector<128xf32> to vector<1x128xf32>
    %13 = vector.extract_strided_slice %0 {offsets = [0, 0], sizes = [8, 128], strides = [1, 1]} : vector<9x128xf32> to vector<8x128xf32>
    %14 = math.exp %9 : vector<8x128xf32>
    %15 = arith.mulf %13, %14 : vector<8x128xf32>
    %16 = arith.addf %15, %10 : vector<8x128xf32>
    %c0_9 = arith.constant 0 : index
    %c0_10 = arith.constant 0 : index
    %17 = vector.load %arg5[%c0_9, %c0_10] : memref<9x8xf32, #tpu.memory_space<vmem>>, vector<9x8xf32>
    %cst_11 = arith.constant dense<0.000000e+00> : vector<9x128xf32>
    %18 = tpu.matmul %17, %16, %cst_11 {dimension_numbers = #tpu.dot_dimension_numbers<[1], [0], [0], [1], [0, 0, 1, 1], [], []>} : vector<9x8xf32>, vector<8x128xf32>, vector<9x128xf32> -> vector<9x128xf32>
    %19 = tpu.iota {dimensions = array<i32: 0>} : vector<9x128xi32>
    %c8_i32 = arith.constant 8 : i32
    %20 = vector.broadcast %c8_i32 : i32 to vector<9x128xi32>
    %21 = arith.cmpi eq, %19, %20 : vector<9x128xi32>
    %22 = vector.shape_cast %12 : vector<1x128xf32> to vector<1x128xf32>
    %23 = vector.broadcast %22 : vector<1x128xf32> to vector<9x128xf32>
    %24 = arith.select %21, %23, %18 : vector<9x128xi1>, vector<9x128xf32>
    %c0_12 = arith.constant 0 : index
    %c0_13 = arith.constant 0 : index
    %25 = vector.load %arg6[%c0_12, %c0_13] : memref<9x128xf32, #tpu.memory_space<vmem>>, vector<9x128xf32>
    tpu.vector_store %arg6[%c0_12, %c0_13], %24 {strides = array<i32>} : memref<9x128xf32, #tpu.memory_space<vmem>>, vector<9x128xf32>,
    return
  }
  func.func @transform_0(%arg0: i32) -> (i32, i32) {
    %c0_i32 = arith.constant 0 : i32
    %c0_i32_0 = arith.constant 0 : i32
    return %c0_i32, %arg0 : i32, i32
  }
  func.func @transform_1(%arg0: i32) -> (i32, i32) {
    %c0_i32 = arith.constant 0 : i32
    %c0_i32_0 = arith.constant 0 : i32
    %c0_i32_1 = arith.constant 0 : i32
    return %c0_i32, %c0_i32_0 : i32, i32
  }
  func.func @transform_2(%arg0: i32) -> (i32, i32) {
    %c0_i32 = arith.constant 0 : i32
    %c0_i32_0 = arith.constant 0 : i32
    %c0_i32_1 = arith.constant 0 : i32
    return %c0_i32, %c0_i32_0 : i32, i32
  }
  func.func @transform_3(%arg0: i32) -> (i32, i32) {
    %c0_i32 = arith.constant 0 : i32
    %c0_i32_0 = arith.constant 0 : i32
    %c0_i32_1 = arith.constant 0 : i32
    return %c0_i32, %c0_i32_0 : i32, i32
  }
  func.func @transform_4(%arg0: i32) -> (i32, i32) {
    %c0_i32 = arith.constant 0 : i32
    %c0_i32_0 = arith.constant 0 : i32
    %c0_i32_1 = arith.constant 0 : i32
    return %c0_i32, %c0_i32_0 : i32, i32
  }
  func.func @transform_5(%arg0: i32) -> (i32, i32) {
    %c0_i32 = arith.constant 0 : i32
    %c0_i32_0 = arith.constant 0 : i32
    return %c0_i32, %arg0 : i32, i32
  }
}

module attributes {stable_mosaic.version = 11 : i64} {
  func.func @_ar_layer2_kernel(%arg0: i32, %arg1: memref<9x128xf32, #tpu.memory_space<vmem>>, %arg2: memref<128x9xf32, #tpu.memory_space<vmem>>, %arg3: memref<16x128xf32, #tpu.memory_space<vmem>>, %arg4: memref<16x1xf32, #tpu.memory_space<vmem>>, %arg5: memref<9x8xf32, #tpu.memory_space<vmem>>, %arg6: memref<9x128xf32, #tpu.memory_space<vmem>>) attributes {dimension_semantics = [#tpu.dimension_semantics<parallel>], iteration_bounds = array<i64: 2>, scalar_prefetch = 0 : i64, scratch_operands = 0 : i64, tpu.core_type = #tpu.core_type<tc>, window_params = [{transform_indices = @transform_0, window_bounds = array<i64: 9, 128>}, {pipeline_mode = #tpu.pipeline_mode<synchronous>, transform_indices = @transform_1, window_bounds = array<i64: 128, 9>}, {pipeline_mode = #tpu.pipeline_mode<synchronous>, transform_indices = @transform_2, window_bounds = array<i64: 16, 128>}, {pipeline_mode = #tpu.pipeline_mode<synchronous>, transform_indices = @transform_3, window_bounds = array<i64: 16, 1>}, {pipeline_mode = #tpu.pipeline_mode<synchronous>, transform_indices = @transform_4, window_bounds = array<i64: 9, 8>}, {transform_indices = @transform_5, window_bounds = array<i64: 9, 128>}]} {
    %c0 = arith.constant 0 : index
    %c0_0 = arith.constant 0 : index
    %0 = vector.load %arg1[%c0, %c0_0] : memref<9x128xf32, #tpu.memory_space<vmem>>, vector<9x128xf32>
    %c0_1 = arith.constant 0 : index
    %c0_2 = arith.constant 0 : index
    %1 = vector.load %arg2[%c0_1, %c0_2] : memref<128x9xf32, #tpu.memory_space<vmem>>, vector<128x9xf32>
    %cst = arith.constant dense<0.000000e+00> : vector<128x128xf32>
    %2 = tpu.matmul %1, %0, %cst {dimension_numbers = #tpu.dot_dimension_numbers<[1], [0], [0], [1], [0, 0, 1, 1], [], []>} : vector<128x9xf32>, vector<9x128xf32>, vector<128x128xf32> -> vector<128x128xf32>
    %3 = math.tanh %2 : vector<128x128xf32>
    %c0_3 = arith.constant 0 : index
    %c0_4 = arith.constant 0 : index
    %4 = vector.load %arg3[%c0_3, %c0_4] : memref<16x128xf32, #tpu.memory_space<vmem>>, vector<16x128xf32>
    %cst_5 = arith.constant dense<0.000000e+00> : vector<16x128xf32>
    %5 = tpu.matmul %4, %3, %cst_5 {dimension_numbers = #tpu.dot_dimension_numbers<[1], [0], [0], [1], [0, 0, 1, 1], [], []>} : vector<16x128xf32>, vector<128x128xf32>, vector<16x128xf32> -> vector<16x128xf32>
    %c0_6 = arith.constant 0 : index
    %c0_7 = arith.constant 0 : index
    %6 = vector.load %arg4[%c0_6, %c0_7] : memref<16x1xf32, #tpu.memory_space<vmem>>, vector<16x1xf32>
    %7 = vector.broadcast %6 : vector<16x1xf32> to vector<16x128xf32>
    %8 = arith.addf %5, %7 : vector<16x128xf32>
    %9 = vector.extract_strided_slice %8 {offsets = [0, 0], sizes = [8, 128], strides = [1, 1]} : vector<16x128xf32> to vector<8x128xf32>
    %10 = vector.extract_strided_slice %8 {offsets = [8, 0], sizes = [8, 128], strides = [1, 1]} : vector<16x128xf32> to vector<8x128xf32>
    %cst_8 = arith.constant dense<0.000000e+00> : vector<128xf32>
    %11 = vector.multi_reduction <add>, %9, %cst_8 [0] : vector<8x128xf32> to vector<128xf32>
    %12 = vector.shape_cast %11 : vector<128xf32> to vector<1x128xf32>
    %13 = vector.extract_strided_slice %0 {offsets = [0, 0], sizes = [8, 128], strides = [1, 1]} : vector<9x128xf32> to vector<8x128xf32>
    %14 = math.exp %9 : vector<8x128xf32>
    %15 = arith.mulf %13, %14 : vector<8x128xf32>
    %16 = arith.addf %15, %10 : vector<8x128xf32>
    %c0_9 = arith.constant 0 : index
    %c0_10 = arith.constant 0 : index
    %17 = vector.load %arg5[%c0_9, %c0_10] : memref<9x8xf32, #tpu.memory_space<vmem>>, vector<9x8xf32>
    %cst_11 = arith.constant dense<0.000000e+00> : vector<9x128xf32>
    %18 = tpu.matmul %17, %16, %cst_11 {dimension_numbers = #tpu.dot_dimension_numbers<[1], [0], [0], [1], [0, 0, 1, 1], [], []>} : vector<9x8xf32>, vector<8x128xf32>, vector<9x128xf32> -> vector<9x128xf32>
    %19 = tpu.iota {dimensions = array<i32: 0>} : vector<9x128xi32>
    %c8_i32 = arith.constant 8 : i32
    %20 = vector.broadcast %c8_i32 : i32 to vector<9x128xi32>
    %21 = arith.cmpi eq, %19, %20 : vector<9x128xi32>
    %22 = vector.shape_cast %12 : vector<1x128xf32> to vector<1x128xf32>
    %23 = vector.broadcast %22 : vector<1x128xf32> to vector<9x128xf32>
    %24 = arith.select %21, %23, %18 : vector<9x128xi1>, vector<9x128xf32>
    %c0_12 = arith.constant 0 : index
    %c0_13 = arith.constant 0 : index
    %25 = vector.load %arg6[%c0_12, %c0_13] : memref<9x128xf32, #tpu.memory_space<vmem>>, vector<9x128xf32>
    tpu.vector_store %arg6[%c0_12, %c0_13], %24 {strides = array<i32>} : memref<9x128xf32, #tpu.memory_space<vmem>>, vector<9x128xf32>,
    return
  }
  func.func @transform_0(%arg0: i32) -> (i32, i32) {
    %c0_i32 = arith.constant 0 : i32
    %c0_i32_0 = arith.constant 0 : i32
    return %c0_i32, %arg0 : i32, i32
  }
  func.func @transform_1(%arg0: i32) -> (i32, i32) {
    %c0_i32 = arith.constant 0 : i32
    %c0_i32_0 = arith.constant 0 : i32
    %c0_i32_1 = arith.constant 0 : i32
    return %c0_i32, %c0_i32_0 : i32, i32
  }
  func.func @transform_2(%arg0: i32) -> (i32, i32) {
    %c0_i32 = arith.constant 0 : i32
    %c0_i32_0 = arith.constant 0 : i32
    %c0_i32_1 = arith.constant 0 : i32
    return %c0_i32, %c0_i32_0 : i32, i32
  }
  func.func @transform_3(%arg0: i32) -> (i32, i32) {
    %c0_i32 = arith.constant 0 : i32
    %c0_i32_0 = arith.constant 0 : i32
    %c0_i32_1 = arith.constant 0 : i32
    return %c0_i32, %c0_i32_0 : i32, i32
  }
  func.func @transform_4(%arg0: i32) -> (i32, i32) {
    %c0_i32 = arith.constant 0 : i32
    %c0_i32_0 = arith.constant 0 : i32
    %c0_i32_1 = arith.constant 0 : i32
    return %c0_i32, %c0_i32_0 : i32, i32
  }
  func.func @transform_5(%arg0: i32) -> (i32, i32) {
    %c0_i32 = arith.constant 0 : i32
    %c0_i32_0 = arith.constant 0 : i32
    return %c0_i32, %arg0 : i32, i32
  }
}

</mosaic_0001>

<bundles_post_ra>
// kernel: tpu_custom_call.1
= control target key start
LH: loop header
LB: loop body
LE: loop exit
PB: predicated region body
PF: predicated region fallthrough
CT: control target
= control target key end

     0   :  { %10 = vsyncpa [#allocation4], 0  ;;  %s1284_s0 = inlined_call_operand.vmem [shape: f32[9,256], index: 0, kind: input, shape index: {}]   ;;  %s1285_s1 = inlined_call_operand.vmem [shape: f32[128,9], index: 1, kind: input, shape index: {}]   ;;  %s1286_s2 = inlined_call_operand.vmem [shape: f32[16,128], index: 2, kind: input, shape index: {}]   ;;  %s1287_s3 = inlined_call_operand.vmem [shape: f32[16,1], index: 3, kind: input, shape index: {}]   ;;  %s1288_s4 = inlined_call_operand.vmem [shape: f32[9,8], index: 4, kind: input, shape index: {}]   ;;  %s1289_s5 = inlined_call_operand.hbm [shape: f32[9,256], index: 5, kind: output, shape index: {}]  }
   0x1   :  { %12 = vsyncpa [#allocation4 + $0x1], 0  ;;  %s1080_s18 = smov 0   ;;  %s1082_s19 = smov 0  }
   0x2   :  { %s1084_s20 = smov 0   ;;  %s1086_s21 = smov 0  }
   0x3 LB: > { %s766_s22 = sadd.s32 4294967295, %s1043_s21   ;;  %s767_s23 = sadd.s32 4294967294, %s1043_s21   ;;  %s1043_s21 = sphi %s1086_s21, %s1295_s21   ;;  %s1039_s20 = sphi %s1084_s20, %s1294_s20   ;;  %s1035_s19 = sphi %s1082_s19, %s1293_s19   ;;  %s1031_s18 = sphi %s1080_s18, %s1292_s18  }
   0x4   : > { %s1103_s24 = sadd.s32 1, %s1043_s21   ;;  %s25_s25 = sadd.s32 1, %s1039_s20 }
   0x5   : > { %s22_s26 = ssub.s32 %s1043_s21, %s1103_s24  ;;  %p32_p0 = scmp.ne.s32.totalorder %s1039_s20, %s1035_s19 }
   0x6   : > { %p23_p1 = scmp.eq.s32.totalorder %s22_s26, 0  ;;  %p33_p2 = scmp.eq.s32.totalorder %s1043_s21, 0 }
   0x7   : > { %p146_p3 = scmp.eq.s32.totalorder %s766_s22, 1  ;;  %p151_p4 = scmp.ne.s32.totalorder %s1035_s19, %s1031_s18 }
   0x8   : > { %s1116_s27 = scalar_select %p23_p1, %s1039_s20, %s25_s25  }
   0x9   : > { %p34_p5 = por %p33_p2, %p32_p0  ;;  %p1118_p6 = por %p146_p3, %p32_p0 }
   0xa   : > { %p152_p7 = scmp.eq.s32.totalorder %s767_s23, 1  ;;  %p769_p9 = scmp.ge.s32.totalorder %s1043_s21, 2 }
   0xc   : > { %p1122_p8 = por %p152_p7, %p151_p4  ;;  %180 = sbr.rel (%p769_p9) target bundleno = 22 (0x16), region = 32 }
  0x11   : > { %183 = sbr.rel (!%p34_p5) target bundleno = 22 (0x16), region = 36  ;;  %s185_s30 = sand.u32 (%p34_p5), 1, %s1039_s20  }
  0x12   : > { %s771_s6 = sshll.u32 (%p34_p5), %s1043_s21, 3  ;;  %s770_s7 = sshll.u32 (%p34_p5), %s185_s30, 4 }
  0x13   : > { %s189_s10 = scalar_lea.vmem (%p34_p5), %s1284_s0, %s771_s6  ;;  %s187_s11 = scalar_lea.vmem (%p34_p5), [#allocation2], %s770_s7 }
  0x14   : > { %v220_v0 = vld [vmem:[%s189_s10] sm:$0xff] (%p34_p5)  ;;  %v222_v1 = vld [vmem:[%s189_s10 + $0x10] sm:$0xff] (%p34_p5) }
  0x15   : > { %221 = vst [vmem:[%s187_s11] sm:$0xff] (%p34_p5), %v220_v0  ;;  %223 = vst [vmem:[%s187_s11 + $0x8] sm:$0xff] (%p34_p5), %v222_v1 }
  0x16 PF: > { %p772_p10 = scmp.ge.s32.totalorder %s1043_s21, 1  ;;  %p228_p11 = scmp.lt.s32.totalorder %s1043_s21, 3 }
  0x18   : > { %p229_p12 = pnand %p772_p10, %p228_p11 }
  0x19   : > { %s235_s12 = sand.u32 (!%p229_p12), 1, %s1035_s19   ;;  %s795_s25 = sshll.u32 (!%p229_p12), %s766_s22, 7 }
  0x1a   : > { %232 = sbr.rel (%p229_p12) target bundleno = 732 (0x2dc), region = 74  ;;  %s1142_s15 = sshll.u32 (!%p229_p12), %s235_s12, 4 }
  0x1b   : > { %s237_s16 = scalar_lea.vmem (!%p229_p12), [#allocation2], %s1142_s15  ;;  %s261_s17 = scalar_lea.vmem (!%p229_p12), [#allocation3], %s1142_s15 }
  0x1c   : > { %s699_s23 = sshll.u32 (!%p229_p12), %s261_s17, 4  ;;  %s1239_s6 = scalar_lea.hbm (!%p229_p12), %s1289_s5, %s795_s25  ;;  %s1234_s23 = int_to_ptr.vmem [resolvable:$true] %s699_s23 }
  0x1d   : > { %s1243_s15 = scalar_lea.sflag (!%p229_p12), [#allocation4], %s235_s12  ;;  %s983_s22 = scalar_lea.vmem (!%p229_p12), %s1234_s23, 256 }
  0x1e   : > { %p984_p13 = scmp.ne.s32.totalorder (!%p229_p12), %s1234_s23, %s983_s22  ;;  %s1046_s7 = smov (!%p229_p12), [#allocation3]  }
  0x1f   : > { %v264_v2 = vld [vmem:[%s1285_s1] sm:$0xff]  ;;  %vm280_vm0 = vcmask 72704   ;;  %vm329_vm1 = vcmask 1040384   ;;  %v263_v3 = vld [vmem:[%s237_s16 + $0x8] sm:$0x1]  ;;  %v266_v6 = vld [vmem:[%s1285_s1 + $0x10] sm:$0xff] }
  0x20   : > { %841 = vmatprep.mubr.msk.f32.mxu0 %vm280_vm0, %v264_v2  ;;  %v1146_v4 = vld [vmem:[%s237_s16] sm:$0xff]  ;;  %837 = vmatprep.subr.msk.mxu0 %vm329_vm1, %v263_v3  ;;  %v265_v5 = vld [vmem:[%s1285_s1 + $0x8] sm:$0xff]  ;;  %v267_v7 = vld [vmem:[%s1285_s1 + $0x18] sm:$0xff]  ;;  %v1045_v22 = vmov 0   ;;  %vm595_vm2 = vcmask 64512   ;;  %p985_p0 = pnand %p984_p13, %p1118_p6  ;;  %s987_s8 = sshll.u32 %s1046_s7, 4  ;;  %s988_s8 = int_to_ptr.vmem [resolvable:$false] %s987_s8 }
  0x21   : > { %838 = vmatpush3.msk.msra.mxu0 %vm329_vm1, %v263_v3  ;;  %v268_v8 = vld [vmem:[%s1285_s1 + $0x20] sm:$0xff]  ;;  %v269_v9 = vld [vmem:[%s1285_s1 + $0x28] sm:$0xff]  ;;  %v270_v10 = vld [vmem:[%s1285_s1 + $0x30] sm:$0xff]  ;;  %948 = vset.pattern.permute.xlu0 %v1045_v22  ;;  %s989_s9 = scalar_lea.vmem %s988_s8, 512  ;;  %p990_p2 = scmp.lt.s32.totalorder %s1234_s23, %s988_s8 }
  0x22   : > { %839 = vmatprep.subr.mxu0 %v1146_v4  ;;  %v271_v11 = vld [vmem:[%s1285_s1 + $0x38] sm:$0xff]  ;;  %v272_v12 = vld [vmem:[%s1285_s1 + $0x40] sm:$0xff]  ;;  %v273_v13 = vld [vmem:[%s1285_s1 + $0x48] sm:$0xff]  ;;  %p986_p1 = pneg %p985_p0  ;;  %p991_p3 = scmp.lt.s32.totalorder %s989_s9, %s983_s22 }
  0x23   : > { %840 = vmatpush3.msra.mxu0 %v1146_v4  ;;  %v274_v14 = vld [vmem:[%s1285_s1 + $0x50] sm:$0xff]  ;;  %v275_v15 = vld [vmem:[%s1285_s1 + $0x58] sm:$0xff]  ;;  %v276_v16 = vld [vmem:[%s1285_s1 + $0x60] sm:$0xff] }
  0x24   : > { %842 = vmatmul.mubr.msk.f32.vlgmr.msra.gmra.mxu0 %vm280_vm0, %v265_v5  ;;  %v277_v17 = vld [vmem:[%s1285_s1 + $0x68] sm:$0xff]  ;;  %v278_v18 = vld [vmem:[%s1285_s1 + $0x70] sm:$0xff]  ;;  %v279_v19 = vld [vmem:[%s1285_s1 + $0x78] sm:$0xff]  ;;  %p992_p4 = por %p991_p3, %p990_p2 }
  0x25   : > { %844 = vmatprep.mubr.msk.f32.mxu0 %vm280_vm0, %v266_v6  ;;  %v494_v20 = vld [vmem:[%s1286_s2] sm:$0xff]  ;;  %v497_v23 = vld [vmem:[%s1287_s3 + $0x8] sm:$0xff] }
  0x26   : > { %897 = vmatprep.mubr.f32.mxu1 %v494_v20  ;;  %v496_v21 = vld [vmem:[%s1287_s3] sm:$0xff]  ;;  %v495_v56 = vld [vmem:[%s1286_s2 + $0x8] sm:$0xff]  ;;  %p993_p5 = pnand %p992_p4, %p986_p1 }
  0x27   : > { %500 = vperm.xlu0 %948, %v496_v21   ;;  %v593_v57 = vld [vmem:[%s1288_s4] sm:$0xff]  ;;  %v594_v5 = vld [vmem:[%s1288_s4 + $0x8] sm:$0x1] }
  0x28   : > { %845 = vmatmul.mubr.msk.f32.gmra.mxu0 %vm280_vm0, %v267_v7 }
  0x29   : > { %847 = vmatprep.mubr.msk.f32.mxu0 %vm280_vm0, %v268_v8  ;;  %v677_v8 = vlaneseq }
  0x2b   : > { %505 = vperm.xlu0 %948, %v497_v23  }
  0x2c   : > { %848 = vmatmul.mubr.msk.f32.gmra.mxu0 %vm280_vm0, %v269_v9 }
  0x2d   : > { %850 = vmatprep.mubr.msk.f32.mxu0 %vm280_vm0, %v270_v10  ;;  %v678_v10 = vshrl.u32 %v677_v8, 7 }
  0x30   : > { %851 = vmatmul.mubr.msk.f32.gmra.mxu0 %vm280_vm0, %v271_v11 }
  0x31   : > { %853 = vmatprep.mubr.msk.f32.mxu0 %vm280_vm0, %v272_v12  ;;  %v679_v12 = vadd.s32 8, %v678_v10 }
  0x33   : > { %vm681_vm3 = vcmp.eq.s32.totalorder %v679_v12, 8 }
  0x34   : > { %854 = vmatmul.mubr.msk.f32.gmra.mxu0 %vm280_vm0, %v273_v13 }
  0x35   : > { %856 = vmatprep.mubr.msk.f32.mxu0 %vm280_vm0, %v274_v14 }
  0x38   : > { %857 = vmatmul.mubr.msk.f32.gmra.mxu0 %vm280_vm0, %v275_v15 }
  0x39   : > { %859 = vmatprep.mubr.msk.f32.mxu0 %vm280_vm0, %v276_v16 }
  0x3c   : > { %860 = vmatmul.mubr.msk.f32.gmra.mxu0 %vm280_vm0, %v277_v17 }
  0x3d   : > { %862 = vmatprep.mubr.msk.f32.mxu0 %vm280_vm0, %v278_v18 }
  0x40   : > { %863 = vmatmul.mubr.msk.f32.gmra.mxu0 %vm280_vm0, %v279_v19 }
  0x41   : > { %902 = vmatprep.mubr.msk.f32.mxu0 %vm595_vm2, %v593_v57 }
  0xa2   : > { %v501_v59 = vpop.permute.xlu0 %500 }
  0xa6   : > { %v506_v63 = vpop.permute.xlu0 %505 }
  0xe4   : > { %v843_v24 = vpop.f32.mrf.mxu0 }
  0xe6   : > { %v399_v25 = vpop.f32.mrf.mxu0 }
  0xe8   : > { %v846_v26 = vpop.f32.mrf.mxu0 }
  0xea   : > { %v409_v27 = vpop.f32.mrf.mxu0 }
  0xec   : > { %v849_v28 = vpop.f32.mrf.mxu0 }
  0xee   : > { %v419_v29 = vpop.f32.mrf.mxu0 }
  0xf0   : > { %v852_v30 = vpop.f32.mrf.mxu0 }
  0xf2   : > { %v429_v31 = vpop.f32.mrf.mxu0 }
  0xf4   : > { %v855_v32 = vpop.f32.mrf.mxu0 }
  0xf6   : > { %v439_v33 = vpop.f32.mrf.mxu0 }
  0xf8   : > { %v858_v34 = vpop.f32.mrf.mxu0 }
  0xfa   : > { %v449_v35 = vpop.f32.mrf.mxu0 }
  0xfc   : > { %v861_v36 = vpop.f32.mrf.mxu0 }
  0xfe   : > { %v459_v37 = vpop.f32.mrf.mxu0 }
 0x100   : > { %v864_v38 = vpop.f32.mrf.mxu0 }
 0x101   : > { %949 = vtanh.f32 %v864_v38 }
 0x102   : > { %v469_v39 = vpop.f32.mrf.mxu0 }
 0x103   : > { %951 = vtanh.f32 %v469_v39 }
 0x104   : > { %953 = vtanh.f32 %v861_v36 }
 0x105   : > { %955 = vtanh.f32 %v459_v37 }
 0x106   : > { %957 = vtanh.f32 %v858_v34 }
 0x107   : > { %959 = vtanh.f32 %v449_v35 }
 0x108   : > { %961 = vtanh.f32 %v855_v32 }
 0x109   : > { %963 = vtanh.f32 %v439_v33 }
 0x10a   : > { %965 = vtanh.f32 %v852_v30 }
 0x10b   : > { %967 = vtanh.f32 %v429_v31 }
 0x10c   : > { %969 = vtanh.f32 %v849_v28 }
 0x10d   : > { %971 = vtanh.f32 %v419_v29 }
 0x10e   : > { %v950_v40 = vpop.eup %949  ;;  %973 = vtanh.f32 %v846_v26 }
 0x10f   : > { %865 = vmatprep.subr.mxu1 %v950_v40  ;;  %975 = vtanh.f32 %v409_v27 }
 0x110   : > { %v952_v41 = vpop.eup %951  ;;  %866 = vmatpush3.msra.mxu1 %v950_v40  ;;  %977 = vtanh.f32 %v843_v24 }
 0x111   : > { %867 = vmatprep.subr.mxu1 %v952_v41  ;;  %v954_v42 = vpop.eup %953  ;;  %979 = vtanh.f32 %v399_v25 }
 0x112   : > { %868 = vmatpush3.msra.mxu1 %v952_v41  ;;  %v956_v43 = vpop.eup %955 }
 0x113   : > { %869 = vmatprep.subr.mxu1 %v954_v42  ;;  %v958_v44 = vpop.eup %957 }
 0x114   : > { %870 = vmatpush3.msra.mxu1 %v954_v42  ;;  %v960_v45 = vpop.eup %959 }
 0x115   : > { %871 = vmatprep.subr.mxu1 %v956_v43  ;;  %v962_v46 = vpop.eup %961 }
 0x116   : > { %872 = vmatpush3.msra.mxu1 %v956_v43  ;;  %v964_v47 = vpop.eup %963 }
 0x117   : > { %873 = vmatprep.subr.mxu1 %v958_v44  ;;  %v966_v48 = vpop.eup %965 }
 0x118   : > { %874 = vmatpush3.msra.mxu1 %v958_v44  ;;  %v968_v49 = vpop.eup %967 }
 0x119   : > { %875 = vmatprep.subr.mxu1 %v960_v45  ;;  %v970_v50 = vpop.eup %969 }
 0x11a   : > { %876 = vmatpush3.msra.mxu1 %v960_v45  ;;  %v972_v51 = vpop.eup %971 }
 0x11b   : > { %877 = vmatprep.subr.mxu1 %v962_v46  ;;  %v974_v52 = vpop.eup %973 }
 0x11c   : > { %878 = vmatpush3.msra.mxu1 %v962_v46  ;;  %v976_v53 = vpop.eup %975 }
 0x11d   : > { %879 = vmatprep.subr.mxu1 %v964_v47  ;;  %v978_v54 = vpop.eup %977 }
 0x11e   : > { %880 = vmatpush3.msra.mxu1 %v964_v47  ;;  %v980_v55 = vpop.eup %979 }
 0x11f   : > { %881 = vmatprep.subr.mxu1 %v966_v48 }
 0x120   : > { %882 = vmatpush3.msra.mxu1 %v966_v48 }
 0x121   : > { %883 = vmatprep.subr.mxu1 %v968_v49 }
 0x122   : > { %884 = vmatpush3.msra.mxu1 %v968_v49 }
 0x123   : > { %885 = vmatprep.subr.mxu1 %v970_v50 }
 0x124   : > { %886 = vmatpush3.msra.mxu1 %v970_v50 }
 0x125   : > { %887 = vmatprep.subr.mxu1 %v972_v51 }
 0x126   : > { %888 = vmatpush3.msra.mxu1 %v972_v51 }
 0x127   : > { %889 = vmatprep.subr.mxu1 %v974_v52 }
 0x128   : > { %890 = vmatpush3.msra.mxu1 %v974_v52 }
 0x129   : > { %891 = vmatprep.subr.mxu1 %v976_v53 }
 0x12a   : > { %892 = vmatpush3.msra.mxu1 %v976_v53 }
 0x12b   : > { %893 = vmatprep.subr.mxu1 %v978_v54 }
 0x12c   : > { %894 = vmatpush3.msra.mxu1 %v978_v54 }
 0x12d   : > { %895 = vmatprep.subr.mxu1 %v980_v55 }
 0x12e   : > { %896 = vmatpush3.msra.mxu1 %v980_v55 }
 0x12f   : > { %898 = vmatmul.mubr.f32.vlgmr.msra.gmra.mxu1 %v495_v56 }
 0x1ef   : > { %v899_v58 = vpop.f32.mrf.mxu1 }
 0x1f0   : > { %v580_v1 = vadd.f32 %v899_v58, %v506_v63 }
 0x1f1   : > { %v574_v60 = vpop.f32.mrf.mxu1 }
 0x1f2   : > { %v575_v61 = vadd.f32 %v574_v60, %v501_v59 }
 0x1f4   : > { %v589_v62 = vmul.f32 1.442695, %v575_v61  ;;  %v583_v6 = vrot.slane %v575_v61, 4 }
 0x1f6   : > { %981 = vpow2.f32 %v589_v62  ;;  %v584_v7 = vadd.f32 %v583_v6, %v575_v61 }
 0x1f8   : > { %v585_v9 = vrot.slane %v584_v7, 2 }
 0x1fa   : > { %v586_v11 = vadd.f32 %v585_v9, %v584_v7 }
 0x1fc   : > { %v587_v13 = vrot.slane %v586_v11, 1 }
 0x203   : > { %v982_v0 = vpop.eup %981 }
 0x204   : > { %v591_v2 = vmul.f32 %v982_v0, %v1146_v4  ;;  %v588_v4 = vadd.f32 %v587_v13, %v586_v11 }
 0x206   : > { %v592_v3 = vadd.f32 %v591_v2, %v580_v1 }
 0x208   : > { %900 = vmatprep.subr.mxu0 %v592_v3 }
 0x209   : > { %901 = vmatpush3.msra.mxu0 %v592_v3 }
 0x20a   : > { %903 = vmatmul.mubr.msk.f32.vlgmr.msra.gmra.mxu0 %vm595_vm2, %v594_v5 }
 0x2ca   : > { %v904_v14 = vpop.f32.mrf.mxu0 }
 0x2cb   : > { %v683_v15 = vsel %vm681_vm3, %v588_v4, %v904_v14 }
 0x2cc   : > { %685 = vst [vmem:[%s261_s17 + $0x8] sm:$0x1] %v683_v15  ;;  %v668_v16 = vpop.f32.mrf.mxu0 }
 0x2cd   : > { %684 = vst [vmem:[%s261_s17] sm:$0xff] %v668_v16 }
 0x2ce   : > { %996 = shalt.err (!%p993_p5)
}
 0x2cf   : > { %s997_s12 = scalar_lea.hbm %s1239_s6, 256  ;;  %s1001_s13 = scalar_lea.hbm %s1289_s5, 512 }
 0x2d0   : > { %p998_p7 = scmp.ne.s32.totalorder %s1239_s6, %s997_s12  ;;  %p1002_p12 = scmp.lt.s32.totalorder %s1239_s6, %s1289_s5 }
 0x2d1   : > { %p1003_p13 = scmp.lt.s32.totalorder %s1001_s13, %s997_s12 }
 0x2d2   : > { %p999_p10 = pnand %p998_p7, %p1118_p6 }
 0x2d3   : > { %p1004_p0 = por %p1003_p13, %p1002_p12 }
 0x2d4   : > { %p1000_p11 = pneg %p999_p10 }
 0x2d6   : > { %p1005_p1 = pnand %p1004_p0, %p1000_p11 }
 0x2d8   : > { %1008 = shalt.err (!%p1005_p1)
}
 0x2d9   : > { %s1047_s17 = smov 128   ;;  %s1048_s25 = smov 256  }
 0x2da   : > { %s1049_s26 = smov 8  }
 0x2db   : > { %905 = dma.vmem_to_hbm [thread:$0]  (%p1118_p6), %s1234_s23, 256, %s1239_s6, %s1243_s15, %s1047_s17, %s1048_s25, %s1049_s26  }
 0x2dc PF: > { %s714_s30 = sand.u32 1, %s1031_s18   ;;  %p908_p2 = pnand %p769_p9, %p1122_p8 }
 0x2dd   : > { %s715_s22 = scalar_lea.sflag [#allocation4], %s714_s30 }
 0x2de   : > { %p909_p3 = pneg %p908_p2 }
 0x2e0   : > { %1026 = dma.done.wait (%p909_p3), %s715_s22, 256  }
 0x2e1   : > { %1028 = vsyncadd (%p909_p3), %s715_s22, 4294967040  ;;  %p15_p4 = scmp.ge.s32.totalorder %s1103_s24, 4   ;;  %s1292_s18 = smov %s1035_s19 }
 0x2e2   : > { %s1293_s19 = smov %s1039_s20  ;;  %s1294_s20 = smov %s1116_s27 }
 0x2e3   : > { %s1295_s21 = smov %s1103_s24  ;;  %17 = sbr.rel (!%p15_p4) target bundleno = 3 (0x3), region = 118 }
 0x2e8   :  { %720 = vsyncpa [#allocation4], 1 }
 0x2e9   :  { %722 = vsyncpa [#allocation4 + $0x1], 1 }

// kernel: tpu_custom_call.1
= control target key start
LH: loop header
LB: loop body
LE: loop exit
PB: predicated region body
PF: predicated region fallthrough
CT: control target
= control target key end

     0   :  { %10 = vsyncpa [#allocation4], 0  ;;  %s1284_s0 = inlined_call_operand.vmem [shape: f32[9,256], index: 0, kind: input, shape index: {}]   ;;  %s1285_s1 = inlined_call_operand.vmem [shape: f32[128,9], index: 1, kind: input, shape index: {}]   ;;  %s1286_s2 = inlined_call_operand.vmem [shape: f32[16,128], index: 2, kind: input, shape index: {}]   ;;  %s1287_s3 = inlined_call_operand.vmem [shape: f32[16,1], index: 3, kind: input, shape index: {}]   ;;  %s1288_s4 = inlined_call_operand.vmem [shape: f32[9,8], index: 4, kind: input, shape index: {}]   ;;  %s1289_s5 = inlined_call_operand.hbm [shape: f32[9,256], index: 5, kind: output, shape index: {}]  }
   0x1   :  { %12 = vsyncpa [#allocation4 + $0x1], 0  ;;  %s1080_s18 = smov 0   ;;  %s1082_s19 = smov 0  }
   0x2   :  { %s1084_s20 = smov 0   ;;  %s1086_s21 = smov 0  }
   0x3 LB: > { %s766_s22 = sadd.s32 4294967295, %s1043_s21   ;;  %s767_s23 = sadd.s32 4294967294, %s1043_s21   ;;  %s1043_s21 = sphi %s1086_s21, %s1295_s21   ;;  %s1039_s20 = sphi %s1084_s20, %s1294_s20   ;;  %s1035_s19 = sphi %s1082_s19, %s1293_s19   ;;  %s1031_s18 = sphi %s1080_s18, %s1292_s18  }
   0x4   : > { %s1103_s24 = sadd.s32 1, %s1043_s21   ;;  %s25_s25 = sadd.s32 1, %s1039_s20 }
   0x5   : > { %s22_s26 = ssub.s32 %s1043_s21, %s1103_s24  ;;  %p32_p0 = scmp.ne.s32.totalorder %s1039_s20, %s1035_s19 }
   0x6   : > { %p23_p1 = scmp.eq.s32.totalorder %s22_s26, 0  ;;  %p33_p2 = scmp.eq.s32.totalorder %s1043_s21, 0 }
   0x7   : > { %p146_p3 = scmp.eq.s32.totalorder %s766_s22, 1  ;;  %p151_p4 = scmp.ne.s32.totalorder %s1035_s19, %s1031_s18 }
   0x8   : > { %s1116_s27 = scalar_select %p23_p1, %s1039_s20, %s25_s25  }
   0x9   : > { %p34_p5 = por %p33_p2, %p32_p0  ;;  %p1118_p6 = por %p146_p3, %p32_p0 }
   0xa   : > { %p152_p7 = scmp.eq.s32.totalorder %s767_s23, 1  ;;  %p769_p9 = scmp.ge.s32.totalorder %s1043_s21, 2 }
   0xc   : > { %p1122_p8 = por %p152_p7, %p151_p4  ;;  %180 = sbr.rel (%p769_p9) target bundleno = 22 (0x16), region = 32 }
  0x11   : > { %183 = sbr.rel (!%p34_p5) target bundleno = 22 (0x16), region = 36  ;;  %s185_s30 = sand.u32 (%p34_p5), 1, %s1039_s20  }
  0x12   : > { %s771_s6 = sshll.u32 (%p34_p5), %s1043_s21, 3  ;;  %s770_s7 = sshll.u32 (%p34_p5), %s185_s30, 4 }
  0x13   : > { %s189_s10 = scalar_lea.vmem (%p34_p5), %s1284_s0, %s771_s6  ;;  %s187_s11 = scalar_lea.vmem (%p34_p5), [#allocation2], %s770_s7 }
  0x14   : > { %v220_v0 = vld [vmem:[%s189_s10] sm:$0xff] (%p34_p5)  ;;  %v222_v1 = vld [vmem:[%s189_s10 + $0x10] sm:$0xff] (%p34_p5) }
  0x15   : > { %221 = vst [vmem:[%s187_s11] sm:$0xff] (%p34_p5), %v220_v0  ;;  %223 = vst [vmem:[%s187_s11 + $0x8] sm:$0xff] (%p34_p5), %v222_v1 }
  0x16 PF: > { %p772_p10 = scmp.ge.s32.totalorder %s1043_s21, 1  ;;  %p228_p11 = scmp.lt.s32.totalorder %s1043_s21, 3 }
  0x18   : > { %p229_p12 = pnand %p772_p10, %p228_p11 }
  0x19   : > { %s235_s12 = sand.u32 (!%p229_p12), 1, %s1035_s19   ;;  %s795_s25 = sshll.u32 (!%p229_p12), %s766_s22, 7 }
  0x1a   : > { %232 = sbr.rel (%p229_p12) target bundleno = 732 (0x2dc), region = 74  ;;  %s1142_s15 = sshll.u32 (!%p229_p12), %s235_s12, 4 }
  0x1b   : > { %s237_s16 = scalar_lea.vmem (!%p229_p12), [#allocation2], %s1142_s15  ;;  %s261_s17 = scalar_lea.vmem (!%p229_p12), [#allocation3], %s1142_s15 }
  0x1c   : > { %s699_s23 = sshll.u32 (!%p229_p12), %s261_s17, 4  ;;  %s1239_s6 = scalar_lea.hbm (!%p229_p12), %s1289_s5, %s795_s25  ;;  %s1234_s23 = int_to_ptr.vmem [resolvable:$true] %s699_s23 }
  0x1d   : > { %s1243_s15 = scalar_lea.sflag (!%p229_p12), [#allocation4], %s235_s12  ;;  %s983_s22 = scalar_lea.vmem (!%p229_p12), %s1234_s23, 256 }
  0x1e   : > { %p984_p13 = scmp.ne.s32.totalorder (!%p229_p12), %s1234_s23, %s983_s22  ;;  %s1046_s7 = smov (!%p229_p12), [#allocation3]  }
  0x1f   : > { %v264_v2 = vld [vmem:[%s1285_s1] sm:$0xff]  ;;  %vm280_vm0 = vcmask 72704   ;;  %vm329_vm1 = vcmask 1040384   ;;  %v263_v3 = vld [vmem:[%s237_s16 + $0x8] sm:$0x1]  ;;  %v266_v6 = vld [vmem:[%s1285_s1 + $0x10] sm:$0xff] }
  0x20   : > { %841 = vmatprep.mubr.msk.f32.mxu0 %vm280_vm0, %v264_v2  ;;  %v1146_v4 = vld [vmem:[%s237_s16] sm:$0xff]  ;;  %837 = vmatprep.subr.msk.mxu0 %vm329_vm1, %v263_v3  ;;  %v265_v5 = vld [vmem:[%s1285_s1 + $0x8] sm:$0xff]  ;;  %v267_v7 = vld [vmem:[%s1285_s1 + $0x18] sm:$0xff]  ;;  %v1045_v22 = vmov 0   ;;  %vm595_vm2 = vcmask 64512   ;;  %p985_p0 = pnand %p984_p13, %p1118_p6  ;;  %s987_s8 = sshll.u32 %s1046_s7, 4  ;;  %s988_s8 = int_to_ptr.vmem [resolvable:$false] %s987_s8 }
  0x21   : > { %838 = vmatpush3.msk.msra.mxu0 %vm329_vm1, %v263_v3  ;;  %v268_v8 = vld [vmem:[%s1285_s1 + $0x20] sm:$0xff]  ;;  %v269_v9 = vld [vmem:[%s1285_s1 + $0x28] sm:$0xff]  ;;  %v270_v10 = vld [vmem:[%s1285_s1 + $0x30] sm:$0xff]  ;;  %948 = vset.pattern.permute.xlu0 %v1045_v22  ;;  %s989_s9 = scalar_lea.vmem %s988_s8, 512  ;;  %p990_p2 = scmp.lt.s32.totalorder %s1234_s23, %s988_s8 }
  0x22   : > { %839 = vmatprep.subr.mxu0 %v1146_v4  ;;  %v271_v11 = vld [vmem:[%s1285_s1 + $0x38] sm:$0xff]  ;;  %v272_v12 = vld [vmem:[%s1285_s1 + $0x40] sm:$0xff]  ;;  %v273_v13 = vld [vmem:[%s1285_s1 + $0x48] sm:$0xff]  ;;  %p986_p1 = pneg %p985_p0  ;;  %p991_p3 = scmp.lt.s32.totalorder %s989_s9, %s983_s22 }
  0x23   : > { %840 = vmatpush3.msra.mxu0 %v1146_v4  ;;  %v274_v14 = vld [vmem:[%s1285_s1 + $0x50] sm:$0xff]  ;;  %v275_v15 = vld [vmem:[%s1285_s1 + $0x58] sm:$0xff]  ;;  %v276_v16 = vld [vmem:[%s1285_s1 + $0x60] sm:$0xff] }
  0x24   : > { %842 = vmatmul.mubr.msk.f32.vlgmr.msra.gmra.mxu0 %vm280_vm0, %v265_v5  ;;  %v277_v17 = vld [vmem:[%s1285_s1 + $0x68] sm:$0xff]  ;;  %v278_v18 = vld [vmem:[%s1285_s1 + $0x70] sm:$0xff]  ;;  %v279_v19 = vld [vmem:[%s1285_s1 + $0x78] sm:$0xff]  ;;  %p992_p4 = por %p991_p3, %p990_p2 }
  0x25   : > { %844 = vmatprep.mubr.msk.f32.mxu0 %vm280_vm0, %v266_v6  ;;  %v494_v20 = vld [vmem:[%s1286_s2] sm:$0xff]  ;;  %v497_v23 = vld [vmem:[%s1287_s3 + $0x8] sm:$0xff] }
  0x26   : > { %897 = vmatprep.mubr.f32.mxu1 %v494_v20  ;;  %v496_v21 = vld [vmem:[%s1287_s3] sm:$0xff]  ;;  %v495_v56 = vld [vmem:[%s1286_s2 + $0x8] sm:$0xff]  ;;  %p993_p5 = pnand %p992_p4, %p986_p1 }
  0x27   : > { %500 = vperm.xlu0 %948, %v496_v21   ;;  %v593_v57 = vld [vmem:[%s1288_s4] sm:$0xff]  ;;  %v594_v5 = vld [vmem:[%s1288_s4 + $0x8] sm:$0x1] }
  0x28   : > { %845 = vmatmul.mubr.msk.f32.gmra.mxu0 %vm280_vm0, %v267_v7 }
  0x29   : > { %847 = vmatprep.mubr.msk.f32.mxu0 %vm280_vm0, %v268_v8  ;;  %v677_v8 = vlaneseq }
  0x2b   : > { %505 = vperm.xlu0 %948, %v497_v23  }
  0x2c   : > { %848 = vmatmul.mubr.msk.f32.gmra.mxu0 %vm280_vm0, %v269_v9 }
  0x2d   : > { %850 = vmatprep.mubr.msk.f32.mxu0 %vm280_vm0, %v270_v10  ;;  %v678_v10 = vshrl.u32 %v677_v8, 7 }
  0x30   : > { %851 = vmatmul.mubr.msk.f32.gmra.mxu0 %vm280_vm0, %v271_v11 }
  0x31   : > { %853 = vmatprep.mubr.msk.f32.mxu0 %vm280_vm0, %v272_v12  ;;  %v679_v12 = vadd.s32 8, %v678_v10 }
  0x33   : > { %vm681_vm3 = vcmp.eq.s32.totalorder %v679_v12, 8 }
  0x34   : > { %854 = vmatmul.mubr.msk.f32.gmra.mxu0 %vm280_vm0, %v273_v13 }
  0x35   : > { %856 = vmatprep.mubr.msk.f32.mxu0 %vm280_vm0, %v274_v14 }
  0x38   : > { %857 = vmatmul.mubr.msk.f32.gmra.mxu0 %vm280_vm0, %v275_v15 }
  0x39   : > { %859 = vmatprep.mubr.msk.f32.mxu0 %vm280_vm0, %v276_v16 }
  0x3c   : > { %860 = vmatmul.mubr.msk.f32.gmra.mxu0 %vm280_vm0, %v277_v17 }
  0x3d   : > { %862 = vmatprep.mubr.msk.f32.mxu0 %vm280_vm0, %v278_v18 }
  0x40   : > { %863 = vmatmul.mubr.msk.f32.gmra.mxu0 %vm280_vm0, %v279_v19 }
  0x41   : > { %902 = vmatprep.mubr.msk.f32.mxu0 %vm595_vm2, %v593_v57 }
  0xa2   : > { %v501_v59 = vpop.permute.xlu0 %500 }
  0xa6   : > { %v506_v63 = vpop.permute.xlu0 %505 }
  0xe4   : > { %v843_v24 = vpop.f32.mrf.mxu0 }
  0xe6   : > { %v399_v25 = vpop.f32.mrf.mxu0 }
  0xe8   : > { %v846_v26 = vpop.f32.mrf.mxu0 }
  0xea   : > { %v409_v27 = vpop.f32.mrf.mxu0 }
  0xec   : > { %v849_v28 = vpop.f32.mrf.mxu0 }
  0xee   : > { %v419_v29 = vpop.f32.mrf.mxu0 }
  0xf0   : > { %v852_v30 = vpop.f32.mrf.mxu0 }
  0xf2   : > { %v429_v31 = vpop.f32.mrf.mxu0 }
  0xf4   : > { %v855_v32 = vpop.f32.mrf.mxu0 }
  0xf6   : > { %v439_v33 = vpop.f32.mrf.mxu0 }
  0xf8   : > { %v858_v34 = vpop.f32.mrf.mxu0 }
  0xfa   : > { %v449_v35 = vpop.f32.mrf.mxu0 }
  0xfc   : > { %v861_v36 = vpop.f32.mrf.mxu0 }
  0xfe   : > { %v459_v37 = vpop.f32.mrf.mxu0 }
 0x100   : > { %v864_v38 = vpop.f32.mrf.mxu0 }
 0x101   : > { %949 = vtanh.f32 %v864_v38 }
 0x102   : > { %v469_v39 = vpop.f32.mrf.mxu0 }
 0x103   : > { %951 = vtanh.f32 %v469_v39 }
 0x104   : > { %953 = vtanh.f32 %v861_v36 }
 0x105   : > { %955 = vtanh.f32 %v459_v37 }
 0x106   : > { %957 = vtanh.f32 %v858_v34 }
 0x107   : > { %959 = vtanh.f32 %v449_v35 }
 0x108   : > { %961 = vtanh.f32 %v855_v32 }
 0x109   : > { %963 = vtanh.f32 %v439_v33 }
 0x10a   : > { %965 = vtanh.f32 %v852_v30 }
 0x10b   : > { %967 = vtanh.f32 %v429_v31 }
 0x10c   : > { %969 = vtanh.f32 %v849_v28 }
 0x10d   : > { %971 = vtanh.f32 %v419_v29 }
 0x10e   : > { %v950_v40 = vpop.eup %949  ;;  %973 = vtanh.f32 %v846_v26 }
 0x10f   : > { %865 = vmatprep.subr.mxu1 %v950_v40  ;;  %975 = vtanh.f32 %v409_v27 }
 0x110   : > { %v952_v41 = vpop.eup %951  ;;  %866 = vmatpush3.msra.mxu1 %v950_v40  ;;  %977 = vtanh.f32 %v843_v24 }
 0x111   : > { %867 = vmatprep.subr.mxu1 %v952_v41  ;;  %v954_v42 = vpop.eup %953  ;;  %979 = vtanh.f32 %v399_v25 }
 0x112   : > { %868 = vmatpush3.msra.mxu1 %v952_v41  ;;  %v956_v43 = vpop.eup %955 }
 0x113   : > { %869 = vmatprep.subr.mxu1 %v954_v42  ;;  %v958_v44 = vpop.eup %957 }
 0x114   : > { %870 = vmatpush3.msra.mxu1 %v954_v42  ;;  %v960_v45 = vpop.eup %959 }
 0x115   : > { %871 = vmatprep.subr.mxu1 %v956_v43  ;;  %v962_v46 = vpop.eup %961 }
 0x116   : > { %872 = vmatpush3.msra.mxu1 %v956_v43  ;;  %v964_v47 = vpop.eup %963 }
 0x117   : > { %873 = vmatprep.subr.mxu1 %v958_v44  ;;  %v966_v48 = vpop.eup %965 }
 0x118   : > { %874 = vmatpush3.msra.mxu1 %v958_v44  ;;  %v968_v49 = vpop.eup %967 }
 0x119   : > { %875 = vmatprep.subr.mxu1 %v960_v45  ;;  %v970_v50 = vpop.eup %969 }
 0x11a   : > { %876 = vmatpush3.msra.mxu1 %v960_v45  ;;  %v972_v51 = vpop.eup %971 }
 0x11b   : > { %877 = vmatprep.subr.mxu1 %v962_v46  ;;  %v974_v52 = vpop.eup %973 }
 0x11c   : > { %878 = vmatpush3.msra.mxu1 %v962_v46  ;;  %v976_v53 = vpop.eup %975 }
 0x11d   : > { %879 = vmatprep.subr.mxu1 %v964_v47  ;;  %v978_v54 = vpop.eup %977 }
 0x11e   : > { %880 = vmatpush3.msra.mxu1 %v964_v47  ;;  %v980_v55 = vpop.eup %979 }
 0x11f   : > { %881 = vmatprep.subr.mxu1 %v966_v48 }
 0x120   : > { %882 = vmatpush3.msra.mxu1 %v966_v48 }
 0x121   : > { %883 = vmatprep.subr.mxu1 %v968_v49 }
 0x122   : > { %884 = vmatpush3.msra.mxu1 %v968_v49 }
 0x123   : > { %885 = vmatprep.subr.mxu1 %v970_v50 }
 0x124   : > { %886 = vmatpush3.msra.mxu1 %v970_v50 }
 0x125   : > { %887 = vmatprep.subr.mxu1 %v972_v51 }
 0x126   : > { %888 = vmatpush3.msra.mxu1 %v972_v51 }
 0x127   : > { %889 = vmatprep.subr.mxu1 %v974_v52 }
 0x128   : > { %890 = vmatpush3.msra.mxu1 %v974_v52 }
 0x129   : > { %891 = vmatprep.subr.mxu1 %v976_v53 }
 0x12a   : > { %892 = vmatpush3.msra.mxu1 %v976_v53 }
 0x12b   : > { %893 = vmatprep.subr.mxu1 %v978_v54 }
 0x12c   : > { %894 = vmatpush3.msra.mxu1 %v978_v54 }
 0x12d   : > { %895 = vmatprep.subr.mxu1 %v980_v55 }
 0x12e   : > { %896 = vmatpush3.msra.mxu1 %v980_v55 }
 0x12f   : > { %898 = vmatmul.mubr.f32.vlgmr.msra.gmra.mxu1 %v495_v56 }
 0x1ef   : > { %v899_v58 = vpop.f32.mrf.mxu1 }
 0x1f0   : > { %v580_v1 = vadd.f32 %v899_v58, %v506_v63 }
 0x1f1   : > { %v574_v60 = vpop.f32.mrf.mxu1 }
 0x1f2   : > { %v575_v61 = vadd.f32 %v574_v60, %v501_v59 }
 0x1f4   : > { %v589_v62 = vmul.f32 1.442695, %v575_v61  ;;  %v583_v6 = vrot.slane %v575_v61, 4 }
 0x1f6   : > { %981 = vpow2.f32 %v589_v62  ;;  %v584_v7 = vadd.f32 %v583_v6, %v575_v61 }
 0x1f8   : > { %v585_v9 = vrot.slane %v584_v7, 2 }
 0x1fa   : > { %v586_v11 = vadd.f32 %v585_v9, %v584_v7 }
 0x1fc   : > { %v587_v13 = vrot.slane %v586_v11, 1 }
 0x203   : > { %v982_v0 = vpop.eup %981 }
 0x204   : > { %v591_v2 = vmul.f32 %v982_v0, %v1146_v4  ;;  %v588_v4 = vadd.f32 %v587_v13, %v586_v11 }
 0x206   : > { %v592_v3 = vadd.f32 %v591_v2, %v580_v1 }
 0x208   : > { %900 = vmatprep.subr.mxu0 %v592_v3 }
 0x209   : > { %901 = vmatpush3.msra.mxu0 %v592_v3 }
 0x20a   : > { %903 = vmatmul.mubr.msk.f32.vlgmr.msra.gmra.mxu0 %vm595_vm2, %v594_v5 }
 0x2ca   : > { %v904_v14 = vpop.f32.mrf.mxu0 }
 0x2cb   : > { %v683_v15 = vsel %vm681_vm3, %v588_v4, %v904_v14 }
 0x2cc   : > { %685 = vst [vmem:[%s261_s17 + $0x8] sm:$0x1] %v683_v15  ;;  %v668_v16 = vpop.f32.mrf.mxu0 }
 0x2cd   : > { %684 = vst [vmem:[%s261_s17] sm:$0xff] %v668_v16 }
 0x2ce   : > { %996 = shalt.err (!%p993_p5)
}
 0x2cf   : > { %s997_s12 = scalar_lea.hbm %s1239_s6, 256  ;;  %s1001_s13 = scalar_lea.hbm %s1289_s5, 512 }
 0x2d0   : > { %p998_p7 = scmp.ne.s32.totalorder %s1239_s6, %s997_s12  ;;  %p1002_p12 = scmp.lt.s32.totalorder %s1239_s6, %s1289_s5 }
 0x2d1   : > { %p1003_p13 = scmp.lt.s32.totalorder %s1001_s13, %s997_s12 }
 0x2d2   : > { %p999_p10 = pnand %p998_p7, %p1118_p6 }
 0x2d3   : > { %p1004_p0 = por %p1003_p13, %p1002_p12 }
 0x2d4   : > { %p1000_p11 = pneg %p999_p10 }
 0x2d6   : > { %p1005_p1 = pnand %p1004_p0, %p1000_p11 }
 0x2d8   : > { %1008 = shalt.err (!%p1005_p1)
}
 0x2d9   : > { %s1047_s17 = smov 128   ;;  %s1048_s25 = smov 256  }
 0x2da   : > { %s1049_s26 = smov 8  }
 0x2db   : > { %905 = dma.vmem_to_hbm [thread:$0]  (%p1118_p6), %s1234_s23, 256, %s1239_s6, %s1243_s15, %s1047_s17, %s1048_s25, %s1049_s26  }
 0x2dc PF: > { %s714_s30 = sand.u32 1, %s1031_s18   ;;  %p908_p2 = pnand %p769_p9, %p1122_p8 }
 0x2dd   : > { %s715_s22 = scalar_lea.sflag [#allocation4], %s714_s30 }
 0x2de   : > { %p909_p3 = pneg %p908_p2 }
 0x2e0   : > { %1026 = dma.done.wait (%p909_p3), %s715_s22, 256  }
 0x2e1   : > { %1028 = vsyncadd (%p909_p3), %s715_s22, 4294967040  ;;  %p15_p4 = scmp.ge.s32.totalorder %s1103_s24, 4   ;;  %s1292_s18 = smov %s1035_s19 }
 0x2e2   : > { %s1293_s19 = smov %s1039_s20  ;;  %s1294_s20 = smov %s1116_s27 }
 0x2e3   : > { %s1295_s21 = smov %s1103_s24  ;;  %17 = sbr.rel (!%p15_p4) target bundleno = 3 (0x3), region = 118 }
 0x2e8   :  { %720 = vsyncpa [#allocation4], 1 }
 0x2e9   :  { %722 = vsyncpa [#allocation4 + $0x1], 1 }

</bundles_post_ra>
